<compile_context>
chip_gen: v5e
topology: v5e:2x2
jax: 0.10.0
libtpu: 0.0.40
codegen_flags: <defaults>
</compile_context>

<pallas_src>
import functools
import math

import jax
import jax.numpy as jnp
from jax.experimental import pallas as pl
from jax.experimental.pallas import tpu as pltpu


def _round_up(x, m):
    return ((x + m - 1) // m) * m


def _tpu_generation():
    """Best-effort TPU generation number (5, 6, 7, ...); 0 if unknown."""
    try:
        kind = jax.devices()[0].device_kind.lower()
    except Exception:
        return 0
    for g in (7, 6, 5, 4):
        if str(g) in kind:
            return g
    return 0


def _int_power(base, n):
    """base ** n for a static integer n >= 1 (square-and-multiply, VPU only)."""
    acc = None
    while n > 0:
        if n & 1:
            acc = base if acc is None else acc * base
        n >>= 1
        if n > 0:
            base = base * base
    return acc


def _focal_loss_kernel(x_ref, o_ref, *, gamma, eps):
    # x_ref: (block_rows, C) tile in native dtype; o_ref: (1, block_rows) f32.
    x = x_ref[...].astype(jnp.float32)
    block_rows = x.shape[0]

    # Numerically stable softmax pieces over the class (lane) axis.
    m = jnp.max(x, axis=-1, keepdims=True)
    xs = x - m
    e = jnp.exp(xs)                                   # one exp / element (EUP)
    denom = jnp.sum(e, axis=-1, keepdims=True)        # XLU lane reduce
    inv_denom = pl.reciprocal(denom, approx=False)    # exact: feeds the result
    log_denom = jnp.log(denom)                        # one log per ROW

    p = e * inv_denom
    log_p = xs - log_denom                            # log-softmax identity

    # clamp(p, eps, 1-eps); mirror the clamp on log_p so it equals
    # log(clamped p) at the clamp boundaries (matches torch exactly).
    p = jnp.clip(p, eps, 1.0 - eps)
    log_p = jnp.clip(log_p, math.log(eps), math.log1p(-eps))

    loss = -p * log_p

    # (1 - p) ** gamma, specialised on the static gamma value.
    g = float(gamma)
    if g != 0.0:
        omp = 1.0 - p
        if g > 0.0 and g.is_integer():
            w = _int_power(omp, int(g))               # cheap VPU multiplies
        elif g > 0.0 and (2.0 * g).is_integer():
            w = jnp.sqrt(omp)                         # half-integer: one sqrt
            k = int(g)                                # g = k + 0.5
            if k >= 1:
                w = w * _int_power(omp, k)
        else:
            # 1 - p >= eps after the clamp, so the log is safe.
            w = jnp.exp(jnp.float32(g) * jnp.log(omp))
        loss = loss * w

    # Lane-dense writeback: one (1, block_rows) full-lane row per tile.
    row_sum = jnp.sum(loss, axis=-1)
    o_ref[...] = row_sum.reshape(1, block_rows).astype(o_ref.dtype)


def focal_loss(target, x, *, gamma=0.0, eps=1e-7, block_rows=None,
               tile_budget_bytes=None):
    """Pallas TPU implementation of FocalLoss.forward(target, input).

    `target` is accepted but unused, exactly like the PyTorch module."""
    del target  # unused, faithful to the reference module
    N, C = x.shape
    gen = _tpu_generation()
    is_v7 = gen >= 7

    itemsize = jnp.dtype(x.dtype).itemsize
    row_align = max(8, 32 // max(1, itemsize))   # 8 f32 / 16 bf16 / 32 int8
    lanes = _round_up(C, 128)                    # VMEM lane footprint of a row

    if block_rows is None:
        if tile_budget_bytes is None:
            # v7x: 64 MiB VMEM shared by 2 TCs -> stay conservative.
            # v5e/v6e: 128 MiB VMEM -> big tiles (>=512 rows ~ HBM roofline).
            tile_budget_bytes = (8 << 20) if is_v7 else (24 << 20)
        # Double-buffered input tile = 2 * rows * lanes * itemsize bytes.
        rows = tile_budget_bytes // (2 * lanes * itemsize)
        rows = max(row_align, min(2048, (rows // row_align) * row_align))
        if is_v7:
            # Aim for >= 8 grid steps (>= 4 per TensorCore) so the BlockSpec
            # pipeline overlaps DMA with compute, but keep tiles >= ~1 MiB to
            # amortise the ~0.35 us per-step overhead.
            rows_for_steps = _round_up(pl.cdiv(N, 8), row_align)
            min_rows_1mb = max(row_align,
                               ((1 << 20) // (lanes * itemsize))
                               // row_align * row_align)
            rows = min(rows, max(rows_for_steps, min_rows_1mb))
        rows = min(rows, _round_up(N, row_align))
        block_rows = max(row_align, rows)
    assert block_rows % row_align == 0

    num_tiles = pl.cdiv(N, block_rows)
    kernel = functools.partial(_focal_loss_kernel, gamma=gamma, eps=eps)
    out = pl.pallas_call(
        kernel,
        out_shape=jax.ShapeDtypeStruct((num_tiles, block_rows), jnp.float32),
        grid=(num_tiles,),
        in_specs=[pl.BlockSpec((block_rows, C), lambda i: (i, 0))],
        out_specs=pl.BlockSpec((1, block_rows), lambda i: (i, 0)),
        compiler_params=pltpu.CompilerParams(
            dimension_semantics=("parallel",),
            vmem_limit_bytes=(32 << 20) if is_v7 else (64 << 20)),
    )(x)
    # Ragged tail rows (if any) hold garbage; they are sliced off here and
    # nothing reduces across rows, so this is safe.
    return out.reshape(-1)[:N]


def focal_loss_ref(target, x, *, gamma=0.0, eps=1e-7):
    """Pure-JAX reference (mirrors the PyTorch code)."""
    del target
    p = jax.nn.softmax(x.astype(jnp.float32), axis=-1)
    p = jnp.clip(p, eps, 1.0 - eps)
    loss = -p * jnp.log(p)
    loss = loss * (1.0 - p) ** gamma
    return jnp.sum(loss, axis=1)


if __name__ == "__main__":
    key = jax.random.PRNGKey(0)
    k1, k2, k3, k4 = jax.random.split(key, 4)

    # Case 1: lane-aligned (N, C) = (16, 128), f32, gamma 0 and integer gamma.
    N, C = 16, 128
    x = jax.random.normal(k1, (N, C), dtype=jnp.float32)
    target = jax.random.randint(k2, (N,), 0, C)  # accepted, unused
    for gamma in (0.0, 2.0):
        out = jax.block_until_ready(focal_loss(target, x, gamma=gamma, eps=1e-7))
        ref = focal_loss_ref(target, x, gamma=gamma, eps=1e-7)
        assert out.shape == (N,)
        assert jnp.allclose(out, ref, atol=1e-5, rtol=1e-5), (
            f"mismatch at gamma={gamma}: max err {jnp.max(jnp.abs(out - ref))}")

    # Case 2: ragged batch + unaligned class count + half-integer gamma
    # (exercises ragged last block, logical-width C=10, sqrt gamma path).
    N2, C2 = 13, 10
    x2 = jax.random.normal(k3, (N2, C2), dtype=jnp.float32)
    t2 = jnp.zeros((N2,), dtype=jnp.int32)
    out2 = jax.block_until_ready(focal_loss(t2, x2, gamma=2.5, eps=1e-7))
    ref2 = focal_loss_ref(t2, x2, gamma=2.5, eps=1e-7)
    assert out2.shape == (N2,)
    assert jnp.allclose(out2, ref2, atol=1e-5, rtol=1e-5), (
        f"mismatch (ragged): max err {jnp.max(jnp.abs(out2 - ref2))}")

    # Case 3: native bf16 input + non-(half-)integer gamma (exp/log fallback).
    N3, C3 = 32, 96
    x3 = jax.random.normal(k4, (N3, C3), dtype=jnp.bfloat16)
    t3 = jnp.zeros((N3,), dtype=jnp.int32)
    out3 = jax.block_until_ready(focal_loss(t3, x3, gamma=0.75, eps=1e-7))
    ref3 = focal_loss_ref(t3, x3, gamma=0.75, eps=1e-7)
    assert out3.shape == (N3,)
    assert jnp.allclose(out3, ref3, atol=1e-5, rtol=1e-5), (
        f"mismatch (bf16): max err {jnp.max(jnp.abs(out3 - ref3))}")

    print("KERNEL_OK")
</pallas_src>

<mosaic_0001>
module attributes {stable_mosaic.version = 11 : i64} {
  func.func @_focal_loss_kernel(%arg0: i32, %arg1: memref<16x128xf32, #tpu.memory_space<vmem>>, %arg2: memref<1x16xf32, #tpu.memory_space<vmem>>) attributes {dimension_semantics = [#tpu.dimension_semantics<parallel>], iteration_bounds = array<i64: 1>, scalar_prefetch = 0 : i64, scratch_operands = 0 : i64, tpu.core_type = #tpu.core_type<tc>, window_params = [{transform_indices = @transform_0, window_bounds = array<i64: 16, 128>}, {transform_indices = @transform_1, window_bounds = array<i64: 1, 16>}]} {
    %c0 = arith.constant 0 : index
    %c0_0 = arith.constant 0 : index
    %0 = vector.load %arg1[%c0, %c0_0] : memref<16x128xf32, #tpu.memory_space<vmem>>, vector<16x128xf32>
    %cst = arith.constant dense<0xFF800000> : vector<16xf32>
    %1 = vector.multi_reduction <maximumf>, %0, %cst [1] : vector<16x128xf32> to vector<16xf32>
    %2 = vector.shape_cast %1 : vector<16xf32> to vector<16x1xf32>
    %3 = vector.broadcast %2 : vector<16x1xf32> to vector<16x128xf32>
    %4 = arith.subf %0, %3 : vector<16x128xf32>
    %5 = math.exp %4 : vector<16x128xf32>
    %cst_1 = arith.constant dense<0.000000e+00> : vector<16xf32>
    %6 = vector.multi_reduction <add>, %5, %cst_1 [1] : vector<16x128xf32> to vector<16xf32>
    %7 = vector.shape_cast %6 : vector<16xf32> to vector<16x1xf32>
    %8 = tpu.reciprocal %7 : vector<16x1xf32> -> vector<16x1xf32>
    %9 = math.log %7 : vector<16x1xf32>
    %10 = vector.broadcast %8 : vector<16x1xf32> to vector<16x128xf32>
    %11 = arith.mulf %5, %10 : vector<16x128xf32>
    %12 = vector.broadcast %9 : vector<16x1xf32> to vector<16x128xf32>
    %13 = arith.subf %4, %12 : vector<16x128xf32>
    %cst_2 = arith.constant 1.000000e-07 : f32
    %cst_3 = arith.constant 0.99999988 : f32
    %14 = vector.broadcast %cst_2 : f32 to vector<16x128xf32>
    %15 = arith.maximumf %14, %11 : vector<16x128xf32>
    %16 = vector.broadcast %cst_3 : f32 to vector<16x128xf32>
    %17 = arith.minimumf %16, %15 : vector<16x128xf32>
    %cst_4 = arith.constant -16.1180954 : f32
    %cst_5 = arith.constant -1.00000008E-7 : f32
    %18 = vector.broadcast %cst_4 : f32 to vector<16x128xf32>
    %19 = arith.maximumf %18, %13 : vector<16x128xf32>
    %20 = vector.broadcast %cst_5 : f32 to vector<16x128xf32>
    %21 = arith.minimumf %20, %19 : vector<16x128xf32>
    %cst_6 = arith.constant 0.000000e+00 : f32
    %22 = vector.broadcast %cst_6 : f32 to vector<16x128xf32>
    %23 = arith.subf %22, %17 : vector<16x128xf32>
    %24 = arith.mulf %23, %21 : vector<16x128xf32>
    %cst_7 = arith.constant dense<0.000000e+00> : vector<16xf32>
    %25 = vector.multi_reduction <add>, %24, %cst_7 [1] : vector<16x128xf32> to vector<16xf32>
    %26 = vector.shape_cast %25 : vector<16xf32> to vector<1x16xf32>
    %c0_8 = arith.constant 0 : index
    %c0_9 = arith.constant 0 : index
    %27 = vector.load %arg2[%c0_8, %c0_9] : memref<1x16xf32, #tpu.memory_space<vmem>>, vector<1x16xf32>
    tpu.vector_store %arg2[%c0_8, %c0_9], %26 {strides = array<i32>} : memref<1x16xf32, #tpu.memory_space<vmem>>, vector<1x16xf32>,
    return
  }
  func.func @transform_0(%arg0: i32) -> (i32, i32) {
    %c0_i32 = arith.constant 0 : i32
    %c0_i32_0 = arith.constant 0 : i32
    return %arg0, %c0_i32 : i32, i32
  }
  func.func @transform_1(%arg0: i32) -> (i32, i32) {
    %c0_i32 = arith.constant 0 : i32
    %c0_i32_0 = arith.constant 0 : i32
    return %arg0, %c0_i32 : i32, i32
  }
}

</mosaic_0001>

<bundles_post_ra>
// kernel: tpu_custom_call.1
= control target key start
LH: loop header
LB: loop body
LE: loop exit
PB: predicated region body
PF: predicated region fallthrough
CT: control target
= control target key end

     0   :  { %6 = vsyncpa [#allocation3], 0  ;;  %s210_s0 = inlined_call_operand.hbm [shape: f32[16,128], index: 0, kind: input, shape index: {}]   ;;  %s211_s1 = inlined_call_operand.hbm [shape: f32[1,16], index: 1, kind: output, shape index: {}]  }
   0x1   :  { %7 = vsyncpa [#allocation4], 0  ;;  %s12_s8 = sshll.u32 %s210_s0, 4  ;;  %s190_s9 = smov [#allocation2]   ;;  %s13_s8 = int_to_ptr.hbm [resolvable:$true] %s12_s8 }
   0x2   :  { %s14_s10 = sshll.u32 %s190_s9, 4  ;;  %s191_s11 = smov 128   ;;  %s15_s10 = int_to_ptr.vmem [resolvable:$true] %s14_s10 }
   0x3   :  { %s192_s12 = smov 8  }
   0x4   :  { %20 = dma.hbm_to_vmem [thread:$0]  %s13_s8, 256, %s15_s10, [#allocation3], %s191_s11, %s191_s11, %s192_s12  }
   0x5   :  { %186 = dma.done.wait [#allocation3], 256  }
   0x6   :  { %187 = vsyncadd [#allocation3], 4294967040  ;;  %v25_v0 = vld [vmem:[#allocation2] sm:$0xff]  ;;  %v26_v1 = vld [vmem:[#allocation2 + $0x8] sm:$0xff]  ;;  %v95_v52 = vlaneseq  ;;  %s193_s0 = smov [#allocation5]   ;;  %s112_s16 = sshll.u32 %s211_s1, 4  ;;  %s113_s16 = int_to_ptr.hbm [resolvable:$true] %s112_s16 }
   0x7   :  { %27 = vmax.xlane.f32.xlu0 %v25_v0  ;;  %s110_s13 = sshll.u32 %s193_s0, 4  ;;  %vm100_vm8 = vcmask 130112   ;;  %vm103_vm9 = vcmask 122880   ;;  %s111_s13 = int_to_ptr.vmem [resolvable:$true] %s110_s13 }
   0x8   :  { %v96_v54 = vand.u32 127, %v95_v52 }
   0xa   :  { %v98_v55 = vadd.s32 4294967288, %v96_v54 }
   0xf   :  { %29 = vmax.xlane.f32.xlu0 %v26_v1 }
  0x7a   :  { %v28_v2 = vpop.xlane.xlu0 %27 }
  0x7b   :  { %v31_v3 = vsub.f32 %v25_v0, %v28_v2 }
  0x7d   :  { %v33_v4 = vmul.f32 1.442695, %v31_v3 }
  0x7f   :  { %126 = vpow2.f32 %v33_v4 }
  0x82   :  { %v30_v5 = vpop.xlane.xlu0 %29 }
  0x83   :  { %v32_v6 = vsub.f32 %v26_v1, %v30_v5 }
  0x85   :  { %v127_v7 = vpop.eup %126  ;;  %v35_v8 = vmul.f32 1.442695, %v32_v6 }
  0x86   :  { %37 = vadd.xlane.f32.xlu1 %v127_v7 }
  0x87   :  { %128 = vpow2.f32 %v35_v8 }
  0x8d   :  { %v129_v9 = vpop.eup %128 }
  0x8e   :  { %39 = vadd.xlane.f32.xlu1 %v129_v9 }
  0xf9   :  { %v38_v10 = vpop.xlane.xlu1 %37 }
  0xfa   :  { %130 = vrcp.f32 %v38_v10  ;;  %v52_v16 = vand.u32 2147483648, %v38_v10  ;;  %v50_v19 = vand.u32 2147483647, %v38_v10  ;;  %vm46_vm1 = vweird.f32 %v38_v10 }
  0xfb   :  { %132 = vlog2.f32 %v38_v10 }
  0xfc   :  { %v53_v22 = vor.u32 1.1754944e-38, %v52_v16  ;;  %vm51_vm3 = vcmp.eq.f32.partialorder %v50_v19, 8.507059e+37 }
 0x100   :  { %v131_v11 = vpop.eup %130 }
 0x101   :  { %v133_v12 = vpop.eup %132  ;;  %v42_v13 = vmul.f32 %v131_v11, %v38_v10  ;;  %v40_v14 = vpop.xlane.xlu1 %39  ;;  %vm47_vm0 = vweird.f32 %v131_v11 }
 0x102   :  { %134 = vrcp.f32 %v40_v14  ;;  %v70_v17 = vmul.f32 0.6931472, %v133_v12  ;;  %vm48_vm2 = vmor %vm46_vm1, %vm47_vm0  ;;  %v64_v30 = vand.u32 2147483647, %v40_v14  ;;  %v66_v31 = vand.u32 2147483648, %v40_v14 }
 0x103   :  { %v43_v15 = vsub.f32 1.0, %v42_v13  ;;  %136 = vlog2.f32 %v40_v14  ;;  %vm60_vm5 = vweird.f32 %v40_v14 }
 0x104   :  { %v75_v23 = vsub.f32 %v31_v3, %v70_v17  ;;  %v67_v38 = vor.u32 1.1754944e-38, %v66_v31  ;;  %vm65_vm7 = vcmp.eq.f32.partialorder %v64_v30, 8.507059e+37 }
 0x105   :  { %v44_v18 = vmul.f32 %v131_v11, %v43_v15 }
 0x106   :  { %v81_v32 = vmax.f32 %v75_v23, -16.118095 }
 0x107   :  { %v45_v20 = vadd.f32 %v131_v11, %v44_v18 }
 0x108   :  { %v135_v21 = vpop.eup %134  ;;  %v83_v39 = vmin.f32 %v81_v32, -1.0000001e-07 }
 0x109   :  { %v56_v24 = vmul.f32 %v135_v21, %v40_v14  ;;  %v49_v25 = vsel %vm48_vm2, %v131_v11, %v45_v20  ;;  %v137_v26 = vpop.eup %136  ;;  %vm61_vm4 = vweird.f32 %v135_v21 }
 0x10a   :  { %v54_v27 = vsel %vm51_vm3, %v53_v22, %v49_v25  ;;  %v72_v35 = vmul.f32 0.6931472, %v137_v26  ;;  %vm62_vm6 = vmor %vm60_vm5, %vm61_vm4 }
 0x10b   :  { %v57_v28 = vsub.f32 1.0, %v56_v24  ;;  %v73_v29 = vmul.f32 %v127_v7, %v54_v27 }
 0x10c   :  { %v76_v42 = vsub.f32 %v32_v6, %v72_v35 }
 0x10d   :  { %v58_v33 = vmul.f32 %v135_v21, %v57_v28  ;;  %v77_v34 = vmax.f32 %v73_v29, 1e-07 }
 0x10e   :  { %v82_v47 = vmax.f32 %v76_v42, -16.118095 }
 0x10f   :  { %v79_v36 = vmin.f32 %v77_v34, 0.9999999  ;;  %v59_v37 = vadd.f32 %v135_v21, %v58_v33 }
 0x110   :  { %v84_v49 = vmin.f32 %v82_v47, -1.0000001e-07 }
 0x111   :  { %v85_v40 = vsub.f32 0.0, %v79_v36  ;;  %v63_v41 = vsel %vm62_vm6, %v135_v21, %v59_v37 }
 0x112   :  { %v68_v43 = vsel %vm65_vm7, %v67_v38, %v63_v41 }
 0x113   :  { %v87_v44 = vmul.f32 %v85_v40, %v83_v39  ;;  %v74_v45 = vmul.f32 %v129_v9, %v68_v43 }
 0x115   :  { %89 = vadd.xlane.f32.xlu2 %v87_v44  ;;  %v78_v46 = vmax.f32 %v74_v45, 1e-07 }
 0x117   :  { %v80_v48 = vmin.f32 %v78_v46, 0.9999999 }
 0x119   :  { %v86_v50 = vsub.f32 0.0, %v80_v48 }
 0x11b   :  { %v88_v51 = vmul.f32 %v86_v50, %v84_v49 }
 0x11d   :  { %91 = vadd.xlane.f32.xlu2 %v88_v51 }
 0x188   :  { %v90_v53 = vpop.xlane.xlu2 %89 }
 0x189   :  { %v97_v57 = vperm.slane %v90_v53, %v96_v54 }
 0x190   :  { %v92_v56 = vpop.xlane.xlu2 %91 }
 0x191   :  { %v99_v58 = vperm.slane %v92_v56, %v98_v55 }
 0x193   :  { %v101_v59 = vsel %vm100_vm8, %v99_v58, %v97_v57 }
 0x194   :  { %104 = vst.msk [vmem:[#allocation5] sm:$0x1] %vm103_vm9, %v101_v59 }
 0x195   :  { %115 = dma.vmem_to_hbm [thread:$0]  %s111_s13, 16, %s113_s16, [#allocation4]  }
 0x196   :  { %188 = dma.done.wait [#allocation4], 16  }
 0x197   :  { %189 = vsyncadd [#allocation4], 4294967280 }
 0x198   :  { %120 = vsyncpa [#allocation3], 1 }
 0x199   :  { %121 = vsyncpa [#allocation4], 1 }

</bundles_post_ra>
